<compile_context>
chip_gen: v7x
topology: tpu7x:2x2x1
jax: 0.10.0
libtpu: 0.0.40
codegen_flags: <defaults>
</compile_context>

<pallas_src>
import functools

import jax
import jax.numpy as jnp
import numpy as np
from jax.experimental import pallas as pl
from jax.experimental.pallas import tpu as pltpu


def _round_up(x, m):
    return ((x + m - 1) // m) * m


# ----------------------------------------------------------------------------
# Ratio loss: pos_ratio = mask.mean(1); mean((pos_ratio - keep_ratio)^2).
# Tiny (B, N) input -> single grid step, scalar result in SMEM.
# ----------------------------------------------------------------------------
def ratio_loss_kernel(mask_ref, out_ref, *, keep_ratio):
    pos_ratio = jnp.mean(mask_ref[...], axis=1, keepdims=True)       # (B, 1)
    out_ref[0, 0] = jnp.mean((pos_ratio - keep_ratio) ** 2)


def _ratio_loss(decision_mask, *, keep_ratio):
    B, N = decision_mask.shape
    kernel = functools.partial(ratio_loss_kernel, keep_ratio=float(keep_ratio))
    out = pl.pallas_call(
        kernel,
        out_shape=jax.ShapeDtypeStruct((1, 1), jnp.float32),
        grid_spec=pltpu.PrefetchScalarGridSpec(
            num_scalar_prefetch=0,
            grid=(1,),
            in_specs=[pl.BlockSpec((B, N), lambda i: (0, 0))],
            out_specs=pl.BlockSpec(memory_space=pltpu.MemorySpace.SMEM),
        ),
    )(decision_mask.astype(jnp.float32))
    return out[0, 0]


# ----------------------------------------------------------------------------
# Fused teacher patch-embed matmul + distillation-MSE partial sums.
# Grid: (num_cores [parallel], steps_per_core [arbitrary]).  Each core owns a
# contiguous range of M-tiles, keeps its own (tm, C) f32 VMEM accumulator of
# diff*diff (element-wise adds only), and writes one (1, 1, C) partial-sum
# block in its epilogue.  Partials are combined with a one-line XLA add.
# ----------------------------------------------------------------------------
def fused_distill_kernel(x_ref, w_ref, b_ref, tf_ref, part_ref, acc_ref):
    i = pl.program_id(1)                     # inner reduction axis (per core)

    @pl.when(i == 0)
    def _():
        acc_ref[...] = jnp.zeros_like(acc_ref)

    # Teacher patch embedding for this tile: bf16 MXU operands, f32 accumulate.
    cls = jnp.dot(x_ref[...], w_ref[...], preferred_element_type=jnp.float32)
    cls = cls + b_ref[...]                                   # (tm, C) f32
    diff = tf_ref[...] - cls
    acc_ref[...] += diff * diff                              # VPU only; no reduce

    @pl.when(i == pl.num_programs(1) - 1)
    def _():
        # One sublane (XLU) reduce per core; final lane reduce happens in XLA.
        part_ref[...] = jnp.sum(acc_ref[...], axis=0,
                                keepdims=True).reshape(part_ref.shape)


# ----------------------------------------------------------------------------
# Module forward.  teacher_params = (w, b) models teacher.forward_features as
# a patch-embed matmul; teacher_params = None -> ratio loss only.
# ----------------------------------------------------------------------------
def convnext_distill_diff_pruning_loss(
        inputs, token_feature, decision_mask, teacher_params=None, *,
        ratio_weight=10.0, distill_weight=0.5, keep_ratio=0.5,
        patch=4, tile_m=4096, num_cores=2):
    ratio_loss = _ratio_loss(decision_mask, keep_ratio=keep_ratio)
    if teacher_params is None:
        return ratio_weight * ratio_loss

    w, b = teacher_params
    B, N, C = token_feature.shape
    Bi, Cin, H, W = inputs.shape
    P = patch
    nh, nw = H // P, W // P
    assert Bi == B and nh * nw == N
    K = Cin * P * P
    M = B * N

    # Row tiling: tm multiple of 16 (bf16 sublane packing); the flattened B*N
    # axis is padded to num_cores * steps_per_core * tm rows.
    tm = _round_up(max(16, min(int(tile_m), _round_up(M, 16))), 16)
    total_steps = _round_up(-(-M // tm), num_cores)
    steps_per_core = total_steps // num_cores
    M_pad = total_steps * tm

    # Teacher inputs (no_grad), NO lane padding on K or C.
    # TODO(synk): patch extraction (reshape/transpose) is still done by XLA in
    # the wrapper; moving it in-kernel or accepting pre-patchified input would
    # remove one extra HBM round-trip of x.
    x = jax.lax.stop_gradient(inputs).astype(jnp.bfloat16)
    x = x.reshape(B, Cin, nh, P, nw, P)
    x = jnp.transpose(x, (0, 2, 4, 1, 3, 5)).reshape(M, K)
    w_bf = jax.lax.stop_gradient(w).astype(jnp.bfloat16).reshape(K, C)
    b_f32 = jax.lax.stop_gradient(b).astype(jnp.float32).reshape(1, C)
    tf = token_feature.astype(jnp.float32).reshape(M, C)
    if M_pad > M:
        x = jnp.pad(x, ((0, M_pad - M), (0, 0)))
        tf = jnp.pad(tf, ((0, M_pad - M), (0, 0)))

    # Conservative VMEM budget (double-buffered streams + accumulator) so a
    # large tile_m still compiles on v5e's small default scoped-VMEM limit.
    vmem_need = (2 * (tm * K * 2 + tm * C * 4)        # x, tf double-buffered
                 + tm * C * 4                          # accumulator
                 + 2 * (K * C * 2 + C * 4 + C * 4))    # w, b, partial out
    vmem_limit = int(min(max(2 * vmem_need, 32 * 2 ** 20), 48 * 2 ** 20))

    partials = pl.pallas_call(
        fused_distill_kernel,
        out_shape=jax.ShapeDtypeStruct((num_cores, 1, C), jnp.float32),
        grid_spec=pltpu.PrefetchScalarGridSpec(
            num_scalar_prefetch=0,
            grid=(num_cores, steps_per_core),
            in_specs=[
                pl.BlockSpec((tm, K),
                             lambda c, i: (c * steps_per_core + i, 0)),  # x
                pl.BlockSpec((K, C), lambda c, i: (0, 0)),   # w (resident)
                pl.BlockSpec((1, C), lambda c, i: (0, 0)),   # b (resident)
                pl.BlockSpec((tm, C),
                             lambda c, i: (c * steps_per_core + i, 0)),  # tf
            ],
            out_specs=pl.BlockSpec((1, 1, C), lambda c, i: (c, 0, 0)),
            scratch_shapes=[pltpu.VMEM((tm, C), jnp.float32)],
        ),
        compiler_params=pltpu.CompilerParams(
            dimension_semantics=("parallel", "arbitrary"),
            vmem_limit_bytes=vmem_limit),
    )(x, w_bf, b_f32, tf)

    # Padded rows contribute exactly sum(b^2) each (x row == 0, tf row == 0);
    # subtract analytically instead of masking every tile in the kernel.
    correction = float(M_pad - M) * jnp.sum(b_f32 * b_f32)
    cls_kl_loss = (jnp.sum(partials) - correction) / float(M * C)
    return ratio_weight * ratio_loss + distill_weight * cls_kl_loss


if __name__ == "__main__":
    # Small shapes: batch=2, 3x16x16 image, patch=4 -> N=16 tokens, embed C=32.
    B, Cin, H, W = 2, 3, 16, 16
    P = 4
    N = (H // P) * (W // P)
    C = 32

    key = jax.random.PRNGKey(0)
    k_in, k_tf, k_mask, k_w, k_b = jax.random.split(key, 5)

    inputs = jax.random.normal(k_in, (B, Cin, H, W), dtype=jnp.float32)
    token_feature = jax.random.normal(k_tf, (B, N, C), dtype=jnp.float32)
    decision_mask = jax.random.uniform(k_mask, (B, N), dtype=jnp.float32)

    # Synthetic teacher patch-embed weights (Conv2d(3,C,k=4,s=4) as a matmul).
    # TODO(synk): the full ConvNeXt teacher backbone is modeled by this single
    # patch-embed matmul; deeper stages are out of scope for this loss kernel.
    w = 0.02 * jax.random.normal(k_w, (Cin * P * P, C), dtype=jnp.float32)
    b = 0.01 * jax.random.normal(k_b, (1, C), dtype=jnp.float32)

    # Pure-JAX reference (same math: bf16 MXU operands, f32 accumulate).
    xp = inputs.astype(jnp.bfloat16).reshape(B, Cin, H // P, P, W // P, P)
    xp = jnp.transpose(xp, (0, 2, 4, 1, 3, 5)).reshape(B * N, Cin * P * P)
    cls_t_ref = (jnp.dot(xp, w.astype(jnp.bfloat16),
                         preferred_element_type=jnp.float32)
                 + b).reshape(B, N, C)
    pos_ratio = decision_mask.mean(axis=1)
    ratio_loss_ref = jnp.mean((pos_ratio - 0.5) ** 2)
    cls_kl_ref = jnp.mean((token_feature - cls_t_ref) ** 2)
    loss_ref = 10.0 * ratio_loss_ref + 0.5 * cls_kl_ref

    # (a) tile_m=16 -> one tile per core, no padded rows.
    loss_a = convnext_distill_diff_pruning_loss(
        inputs, token_feature, decision_mask, (w, b), tile_m=16)
    loss_a = jax.block_until_ready(loss_a)
    np.testing.assert_allclose(np.asarray(loss_a), np.asarray(loss_ref),
                               rtol=1e-4, atol=1e-5)

    # (b) default tile_m -> core 1 sees only padded rows; exercises the
    #     analytic padded-row correction path.
    loss_b = convnext_distill_diff_pruning_loss(
        inputs, token_feature, decision_mask, (w, b))
    loss_b = jax.block_until_ready(loss_b)
    np.testing.assert_allclose(np.asarray(loss_b), np.asarray(loss_ref),
                               rtol=1e-4, atol=1e-5)

    # (c) teacher_model=None branch: ratio loss only.
    loss_none = convnext_distill_diff_pruning_loss(
        inputs, token_feature, decision_mask, None)
    loss_none = jax.block_until_ready(loss_none)
    np.testing.assert_allclose(np.asarray(loss_none),
                               np.asarray(10.0 * ratio_loss_ref),
                               rtol=1e-5, atol=1e-6)

    print("KERNEL_OK")
</pallas_src>

<mosaic_0001>
module attributes {stable_mosaic.version = 11 : i64} {
  func.func @ratio_loss_kernel(%arg0: i32, %arg1: memref<2x16xf32, #tpu.memory_space<vmem>>, %arg2: memref<1x1xf32, #tpu.memory_space<smem>>) attributes {dimension_semantics = [#tpu.dimension_semantics<arbitrary>], iteration_bounds = array<i64: 1>, scalar_prefetch = 0 : i64, scratch_operands = 0 : i64, tpu.core_type = #tpu.core_type<tc>, window_params = [{pipeline_mode = #tpu.pipeline_mode<synchronous>, transform_indices = @transform_0, window_bounds = array<i64: 2, 16>}, {transform_indices = @transform_1, window_bounds = array<i64: 1, 1>}]} {
    %c0 = arith.constant 0 : index
    %c0_0 = arith.constant 0 : index
    %0 = vector.load %arg1[%c0, %c0_0] : memref<2x16xf32, #tpu.memory_space<vmem>>, vector<2x16xf32>
    %cst = arith.constant dense<0.000000e+00> : vector<2xf32>
    %1 = vector.multi_reduction <add>, %0, %cst [1] : vector<2x16xf32> to vector<2xf32>
    %2 = vector.shape_cast %1 : vector<2xf32> to vector<2x1xf32>
    %cst_1 = arith.constant 1.600000e+01 : f32
    %3 = vector.broadcast %cst_1 : f32 to vector<2x1xf32>
    %4 = arith.divf %2, %3 : vector<2x1xf32>
    %cst_2 = arith.constant 5.000000e-01 : f32
    %5 = vector.broadcast %cst_2 : f32 to vector<2x1xf32>
    %6 = arith.subf %4, %5 : vector<2x1xf32>
    %7 = arith.mulf %6, %6 : vector<2x1xf32>
    %8 = vector.shape_cast %7 : vector<2x1xf32> to vector<1x2x1xf32>
    %cst_3 = arith.constant dense<0.000000e+00> : vector<1xf32>
    %9 = vector.multi_reduction <add>, %8, %cst_3 [1, 2] : vector<1x2x1xf32> to vector<1xf32>
    %10 = vector.shape_cast %9 : vector<1xf32> to vector<1x1x1xf32>
    %11 = vector.extract %10[0, 0, 0] : f32 from vector<1x1x1xf32>
    %cst_4 = arith.constant 2.000000e+00 : f32
    %12 = arith.divf %11, %cst_4 : f32
    %c0_5 = arith.constant 0 : index
    %c0_6 = arith.constant 0 : index
    %13 = memref.load %arg2[%c0_5, %c0_6] : memref<1x1xf32, #tpu.memory_space<smem>>
    memref.store %12, %arg2[%c0_5, %c0_6] : memref<1x1xf32, #tpu.memory_space<smem>>
    return
  }
  func.func @transform_0(%arg0: i32) -> (i32, i32) {
    %c0_i32 = arith.constant 0 : i32
    %c0_i32_0 = arith.constant 0 : i32
    %c0_i32_1 = arith.constant 0 : i32
    return %c0_i32, %c0_i32_0 : i32, i32
  }
  func.func @transform_1(%arg0: i32) -> (i32, i32) {
    %c0_i32 = arith.constant 0 : i32
    %c0_i32_0 = arith.constant 0 : i32
    %c0_i32_1 = arith.constant 0 : i32
    return %c0_i32, %c0_i32_0 : i32, i32
  }
}

</mosaic_0001>

<bundles_post_ra>
// kernel: tpu_custom_call.1
= control target key start
LH: loop header
LB: loop body
LE: loop exit
PB: predicated region body
PF: predicated region fallthrough
CT: control target
= control target key end

     0   :  { %6 = vsyncpa [#allocation3], 0  ;;  %s137_s0 = inlined_call_operand.hbm [shape: f32[2,16], index: 0, kind: input, shape index: {}]   ;;  %s138_s1 = inlined_call_operand.hbm [shape: f32[1,1], index: 1, kind: output, shape index: {}]  }
   0x1   :  { %7 = vsyncpa [#allocation4], 0  ;;  %s101_s6 = smov [#allocation2]   ;;  %s65_s10 = scalar_lea.hbm %s137_s0, 32 }
   0x2   :  { %s14_s7 = sshll.u32 %s101_s6, 4  ;;  %p66_p0 = scmp.ne.s32.totalorder %s137_s0, %s65_s10  ;;  %s15_s7 = int_to_ptr.vmem [resolvable:$true] %s14_s7 }
   0x3   :  { %p69_p1 = scmp.lt.u32.totalorder %s65_s10, %s137_s0 }
   0x5   :  { %p71_p2 = pnand %p69_p1, %p66_p0 }
   0x7   :  { %74 = shalt.err (!%p71_p2)
}
   0x8   :  { %s75_s15 = scalar_lea.vmem %s15_s7, 32  ;;  %p80_p4 = scmp.lt.s32.totalorder %s15_s7, %s15_s7 }
   0x9   :  { %p76_p3 = scmp.ne.s32.totalorder %s15_s7, %s75_s15  ;;  %p81_p5 = scmp.lt.s32.totalorder %s75_s15, %s75_s15 }
   0xb   :  { %p82_p6 = por %p81_p5, %p80_p4 }
   0xd   :  { %p83_p7 = pnand %p82_p6, %p76_p3 }
   0xf   :  { %86 = shalt.err (!%p83_p7)
}
  0x10   :  { %17 = dma.hbm_to_vmem [thread:$0]  %s137_s0, 32, %s15_s7, [#allocation3]  }
  0x11   :  { %97 = dma.done.wait [#allocation3], 32  }
  0x12   :  { %98 = vsyncadd [#allocation3], 4294967264  ;;  %vm22_vm0 = vcmask 123904   ;;  %v21_v0 = vld [vmem:[#allocation2] sm:$0x3]  ;;  %vm30_vm1 = vcmask 1024  }
  0x13   :  { %v23_v1 = vsel %vm22_vm0, %v21_v0, 0.0  ;;  %s87_s21 = scalar_lea.hbm %s138_s1, 16 }
  0x14   :  { %24 = vadd.xlane.f32.xlu0 %v23_v1  ;;  %p88_p8 = scmp.ne.s32.totalorder %s138_s1, %s87_s21  ;;  %p91_p9 = scmp.lt.u32.totalorder %s87_s21, %s138_s1 }
  0x16   :  { %p93_p10 = pnand %p91_p9, %p88_p8 }
  0xa1   :  { %v25_v2 = vpop.xlane.xlu0 %24 }
  0xa2   :  { %v27_v3 = vmul.f32 0.0625, %v25_v2 }
  0xa4   :  { %v60_v4 = vadd.f32 -0.5, %v27_v3 }
  0xa6   :  { %v29_v5 = vmul.f32 %v60_v4, %v60_v4 }
  0xa8   :  { %v31_v6 = vsel %vm30_vm1, %v29_v5, 0.0 }
  0xa9   :  { %32 = vadd.xlane.f32.xlu0 %v31_v6 }
 0x136   :  { %v33_v7 = vpop.xlane.xlu0 %32 }
 0x137   :  { %v34_v8 = vrot.slane %v33_v7, 4 }
 0x139   :  { %v35_v9 = vadd.f32 %v34_v8, %v33_v7 }
 0x13b   :  { %v36_v10 = vrot.slane %v35_v9, 2 }
 0x13d   :  { %v37_v11 = vadd.f32 %v36_v10, %v35_v9 }
 0x13f   :  { %v38_v12 = vrot.slane %v37_v11, 1 }
 0x141   :  { %v39_v13 = vadd.f32 %v38_v12, %v37_v11 }
 0x143   :  { %61 = vpush %v39_v13 }
 0x174   :  { %s62_s0 = spop %61 }
 0x175   :  { %s43_s18 = smul.f32 0.5, %s62_s0 }
 0x177   :  { %45 = sst [smem:[#allocation5]] %s43_s18 }
 0x178   :  { %96 = shalt.err (!%p93_p10)
}
 0x179   :  { %s102_s26 = smov [#allocation5]  }
 0x17a   :  { %53 = dma.smem_to_hbm %s102_s26, 16, %s138_s1, [#allocation4]  }
 0x17b   :  { %99 = dma.done.wait [#allocation4], 16  }
 0x17c   :  { %100 = vsyncadd [#allocation4], 4294967280 }
 0x17d   :  { %57 = sfence }
 0x17e   :  { %58 = vsyncpa [#allocation3], 1 }
 0x17f   :  { %59 = vsyncpa [#allocation4], 1 }

</bundles_post_ra>
